<compile_context>
chip_gen: v7x
topology: tpu7x:2x2x1
jax: 0.10.0
libtpu: 0.0.40
codegen_flags: <defaults>
</compile_context>

<pallas_src>
import functools

import jax
import jax.numpy as jnp
from jax.experimental import pallas as pl
from jax.experimental.pallas import tpu as pltpu


_VMEM_LIMIT = 48 * 1024 * 1024   # leave headroom on v7x (64 MiB physical per TensorCore)
_FUSE_MAX_PIXELS = 1024          # fuse stride-1 bottlenecks when H*W <= this


# ----------------------------------------------------------------------------
# Batch-folded, M-tiled 1x1 conv GEMM:  out = [relu]( x @ w * scale + bias [+ residual] )
# ----------------------------------------------------------------------------

def _gemm_kernel(*refs, relu, has_res):
    if has_res:
        x_ref, w_ref, sb_ref, r_ref, o_ref = refs
    else:
        x_ref, w_ref, sb_ref, o_ref = refs
        r_ref = None
    acc = jnp.dot(x_ref[...], w_ref[...], preferred_element_type=jnp.float32)
    y = acc * sb_ref[0:1] + sb_ref[1:2]                      # folded BN (f32 epilogue)
    if has_res:
        y = y + r_ref[...].astype(jnp.float32)               # fused residual add
    if relu:
        y = jnp.maximum(y, 0.0)
    o_ref[...] = y.astype(o_ref.dtype)


@functools.lru_cache(maxsize=None)
def _build_gemm(m, k, cout, tm, tn, relu, has_res):
    in_specs = [
        pl.BlockSpec((tm, k), lambda j, i: (i, 0)),          # activations (streamed)
        pl.BlockSpec((k, tn), lambda j, i: (0, j)),          # weights (resident per Cout tile)
        pl.BlockSpec((2, tn), lambda j, i: (0, j)),          # merged BN scale/bias
    ]
    if has_res:
        in_specs.append(pl.BlockSpec((tm, tn), lambda j, i: (i, j)))
    cost = pl.CostEstimate(
        flops=2 * m * k * cout, transcendentals=0,
        bytes_accessed=2 * (m * k + k * cout + m * cout * (2 if has_res else 1)))
    return pl.pallas_call(
        functools.partial(_gemm_kernel, relu=relu, has_res=has_res),
        out_shape=jax.ShapeDtypeStruct((m, cout), jnp.bfloat16),
        grid=(cout // tn, m // tm),                          # inner loop over M: weights resident
        in_specs=in_specs,
        out_specs=pl.BlockSpec((tm, tn), lambda j, i: (i, j)),
        compiler_params=pltpu.CompilerParams(
            dimension_semantics=("parallel", "parallel"),
            vmem_limit_bytes=_VMEM_LIMIT),
        cost_estimate=cost,
    )


def _pick_tm(m):
    """Largest M tile <= 512 that is a multiple of 8 and divides M (else full extent)."""
    if m % 8:
        return m
    for tm in range(min(512, m), 0, -8):
        if m % tm == 0:
            return tm
    return m


def _conv1x1(xf, wg, sb, *, relu, residual=None):
    m, k = xf.shape
    cout = wg.shape[-1]
    tn = cout if cout <= 256 else 256
    tm = _pick_tm(m)
    fn = _build_gemm(m, k, cout, tm, tn, bool(relu), residual is not None)
    args = (xf, wg, sb) + (() if residual is None else (residual,))
    return fn(*args)


# ----------------------------------------------------------------------------
# kh-row-tap conv GEMM (7x7 stem, stride-2 3x3, large-map 3x3); per image, weight-resident grid
# ----------------------------------------------------------------------------

def _tap_conv_kernel(x_ref, w_ref, sb_ref, o_ref, *, offsets, mo, relu):
    tn = o_ref.shape[2]
    acc = jnp.zeros((mo, tn), jnp.float32)
    for t, off in enumerate(offsets):                        # static kh row taps
        acc = acc + jnp.dot(x_ref[0, pl.ds(off, mo), :], w_ref[t],
                            preferred_element_type=jnp.float32)
    y = acc * sb_ref[0:1] + sb_ref[1:2]
    if relu:
        y = jnp.maximum(y, 0.0)
    o_ref[0] = y.astype(o_ref.dtype)


@functools.lru_cache(maxsize=None)
def _build_tap_conv(n, rows, kc, kh, cout, mo, tn, offsets, relu):
    cost = pl.CostEstimate(
        flops=2 * n * mo * kc * kh * cout, transcendentals=0,
        bytes_accessed=2 * (n * rows * kc + kh * kc * cout + n * mo * cout))
    return pl.pallas_call(
        functools.partial(_tap_conv_kernel, offsets=offsets, mo=mo, relu=relu),
        out_shape=jax.ShapeDtypeStruct((n, mo, cout), jnp.bfloat16),
        grid=(cout // tn, n),                                # weight tile resident across images
        in_specs=[
            pl.BlockSpec((1, rows, kc), lambda j, i: (i, 0, 0)),   # per-image activation slab
            pl.BlockSpec((kh, kc, tn), lambda j, i: (0, 0, j)),    # weights (kh, kw*cin, tn)
            pl.BlockSpec((2, tn), lambda j, i: (0, j)),            # merged BN scale/bias
        ],
        out_specs=pl.BlockSpec((1, mo, tn), lambda j, i: (i, 0, j)),
        compiler_params=pltpu.CompilerParams(
            dimension_semantics=("parallel", "parallel"),
            vmem_limit_bytes=_VMEM_LIMIT),
        cost_estimate=cost,
    )


def conv_bn(x, p, *, stride, padding, relu, residual=None):
    """Fused conv + folded-BN (+ReLU) (+residual add).  x: NHWC bf16."""
    n, h, w, cin = x.shape
    kh, kw = p['kh'], p['kw']
    cout = p['w'].shape[-1]
    s = stride
    ho = (h + 2 * padding - kh) // s + 1
    wo = (w + 2 * padding - kw) // s + 1
    mo = ho * wo

    if kh == 1 and kw == 1:                      # pointwise conv: batch-folded M-tiled GEMM
        xs = x if s == 1 else x[:, ::s, ::s, :]
        res = None if residual is None else residual.reshape(n * mo, cout)
        out = _conv1x1(xs.reshape(n * mo, cin), p['w'].reshape(cin, cout), p['sb'],
                       relu=relu, residual=res)
        return out.reshape(n, ho, wo, cout)

    assert residual is None
    wg = p['w'].reshape(kh, kw * cin, cout)
    xp = jnp.pad(x, ((0, 0), (padding, padding), (padding, padding), (0, 0)))
    hp = h + 2 * padding
    # fold kw taps into the channel axis once (kw-wide copy, NOT a kh*kw im2col blow-up)
    cols = [xp[:, :, dj:dj + s * (wo - 1) + 1:s, :] for dj in range(kw)]
    xcat = jnp.concatenate(cols, axis=-1)                    # (n, hp, wo, kw*cin)
    if s == 1:
        xf = xcat.reshape(n, hp * wo, kw * cin)
        offsets = tuple(di * wo for di in range(kh))
        assert ho + kh - 1 <= hp, (ho, kh, hp)
    else:
        # phase-split H so every kh tap becomes a contiguous row window within its phase plane
        phases = [xcat[:, ph::s] for ph in range(s)]
        phase_rows = [ph_arr.shape[1] for ph_arr in phases]
        bases, row_off = [], 0
        for rph in phase_rows:
            bases.append(row_off)
            row_off += rph * wo
        xf = jnp.concatenate(
            [ph_arr.reshape(n, -1, kw * cin) for ph_arr in phases], axis=1)
        offsets = tuple(bases[di % s] + (di // s) * wo for di in range(kh))
        for di in range(kh):                                 # tap window stays inside its phase
            assert di // s + ho <= phase_rows[di % s], (di, ho, phase_rows)
    rows, kc = xf.shape[1], xf.shape[2]
    tn = cout if cout <= 256 else 256
    fn = _build_tap_conv(n, rows, kc, kh, cout, mo, tn, offsets, bool(relu))
    return fn(xf, wg, p['sb']).reshape(n, ho, wo, cout)


# ----------------------------------------------------------------------------
# Fused bottleneck (stride 1, no downsample): 1x1 -> in-VMEM padded 3x3 -> 1x1 + res + ReLU
# ----------------------------------------------------------------------------

def _bottleneck_kernel(x_ref, w1_ref, sb1_ref, w2_ref, sb2_ref, w3_ref, sb3_ref,
                       o_ref, p_ref, h2_ref, hc_ref, *, hh, ww, width):
    mo = hh * ww
    wpp = ww + 2                                  # padded / virtual row pitch
    mov = hh * wpp                                # virtual output rows (wpp-wide, garbage cols)
    x = x_ref[0]                                  # (mo, 4*width) bf16

    # conv1: 1x1 + BN + ReLU  ->  compact (mo, width)
    a1 = jnp.dot(x, w1_ref[...], preferred_element_type=jnp.float32)
    hc_ref[...] = jnp.maximum(a1 * sb1_ref[0:1] + sb1_ref[1:2], 0.0).astype(jnp.bfloat16)

    # scatter valid rows into a zero-padded slab with row pitch wpp (spatial zero padding)
    p_ref[...] = jnp.zeros_like(p_ref)
    for r in range(hh):
        p_ref[(r + 1) * wpp + 1:(r + 1) * wpp + 1 + ww, :] = hc_ref[r * ww:(r + 1) * ww, :]

    # conv2: 3x3 / stride 1 / pad 1 as 9 row-tap GEMMs on the padded slab (K = width each)
    acc = jnp.zeros((mov, width), jnp.float32)
    for di in range(3):
        for dj in range(3):
            acc = acc + jnp.dot(p_ref[pl.ds(di * wpp + dj, mov), :], w2_ref[di * 3 + dj],
                                preferred_element_type=jnp.float32)
    h2_ref[...] = jnp.maximum(acc * sb2_ref[0:1] + sb2_ref[1:2], 0.0).astype(jnp.bfloat16)

    # drop the garbage columns (ww..wpp) of the virtual grid -> compact (mo, width)
    for r in range(hh):
        hc_ref[r * ww:(r + 1) * ww, :] = h2_ref[r * wpp:r * wpp + ww, :]

    # conv3: 1x1 + BN + fused residual add + ReLU
    a3 = jnp.dot(hc_ref[...], w3_ref[...], preferred_element_type=jnp.float32)
    y = a3 * sb3_ref[0:1] + sb3_ref[1:2] + x.astype(jnp.float32)
    o_ref[0] = jnp.maximum(y, 0.0).astype(o_ref.dtype)


@functools.lru_cache(maxsize=None)
def _build_bottleneck(n, hh, ww, cio, width):
    mo = hh * ww
    wpp = ww + 2
    mov = hh * wpp
    prows = (hh + 3) * wpp           # extra rows so tap windows for garbage cols stay in-bounds
    cost = pl.CostEstimate(
        flops=2 * n * (mo * cio * width + 9 * mov * width * width + mo * width * cio),
        transcendentals=0,
        bytes_accessed=2 * (2 * n * mo * cio + 2 * cio * width + 9 * width * width + 6 * cio))
    return pl.pallas_call(
        functools.partial(_bottleneck_kernel, hh=hh, ww=ww, width=width),
        out_shape=jax.ShapeDtypeStruct((n, mo, cio), jnp.bfloat16),
        grid=(n,),
        in_specs=[
            pl.BlockSpec((1, mo, cio), lambda i: (i, 0, 0)),       # x (also the residual)
            pl.BlockSpec((cio, width), lambda i: (0, 0)),          # w1
            pl.BlockSpec((2, width), lambda i: (0, 0)),            # sb1
            pl.BlockSpec((9, width, width), lambda i: (0, 0, 0)),  # w2 (9 taps, cin, cout)
            pl.BlockSpec((2, width), lambda i: (0, 0)),            # sb2
            pl.BlockSpec((width, cio), lambda i: (0, 0)),          # w3
            pl.BlockSpec((2, cio), lambda i: (0, 0)),              # sb3
        ],
        out_specs=pl.BlockSpec((1, mo, cio), lambda i: (i, 0, 0)),
        scratch_shapes=[pltpu.VMEM((prows, width), jnp.bfloat16),  # zero-padded 3x3 input slab
                        pltpu.VMEM((mov, width), jnp.bfloat16),    # conv2 virtual-grid output
                        pltpu.VMEM((mo, width), jnp.bfloat16)],    # compact intermediate
        compiler_params=pltpu.CompilerParams(
            dimension_semantics=("parallel",),
            vmem_limit_bytes=_VMEM_LIMIT),
        cost_estimate=cost,
    )


def fused_bottleneck(x, block):
    n, hh, ww, cio = x.shape
    width = block['width']
    fn = _build_bottleneck(n, hh, ww, cio, width)
    out = fn(x.reshape(n, hh * ww, cio),
             block['conv1']['w'].reshape(cio, width), block['conv1']['sb'],
             block['conv2']['w'], block['conv2']['sb'],
             block['conv3']['w'].reshape(width, cio), block['conv3']['sb'])
    return out.reshape(n, hh, ww, cio)


# ----------------------------------------------------------------------------
# MaxPool 3x3 / stride 2 / padding 1 (PyTorch semantics) via 4 stride-2 phase planes
# ----------------------------------------------------------------------------

def _maxpool_kernel(ee_ref, eo_ref, oe_ref, oo_ref, o_ref, *, ho, wo):
    def win(ref, dh, dw):
        return ref[0, pl.ds(dh, ho), pl.ds(dw, wo), :]
    m = win(ee_ref, 0, 0)
    for ref, dh, dw in ((ee_ref, 0, 1), (ee_ref, 1, 0), (ee_ref, 1, 1),
                        (eo_ref, 0, 0), (eo_ref, 1, 0),
                        (oe_ref, 0, 0), (oe_ref, 0, 1),
                        (oo_ref, 0, 0)):
        m = jnp.maximum(m, win(ref, dh, dw))
    o_ref[0] = m


@functools.lru_cache(maxsize=None)
def _build_maxpool(n, hq, wq, c, ho, wo, dtype):
    phase_spec = pl.BlockSpec((1, hq, wq, c), lambda i: (i, 0, 0, 0))
    return pl.pallas_call(
        functools.partial(_maxpool_kernel, ho=ho, wo=wo),
        out_shape=jax.ShapeDtypeStruct((n, ho, wo, c), dtype),
        grid=(n,),
        in_specs=[phase_spec] * 4,
        out_specs=pl.BlockSpec((1, ho, wo, c), lambda i: (i, 0, 0, 0)),
        compiler_params=pltpu.CompilerParams(
            dimension_semantics=("parallel",),
            vmem_limit_bytes=_VMEM_LIMIT),
    )


def maxpool_3x3_s2(x):
    n, h, w, c = x.shape
    ho = (h + 2 - 3) // 2 + 1
    wo = (w + 2 - 3) // 2 + 1
    hp = h + 2 + (h % 2)
    wp = w + 2 + (w % 2)
    neg = float(jnp.finfo(x.dtype).min)
    xp = jnp.pad(x, ((0, 0), (1, hp - h - 1), (1, wp - w - 1), (0, 0)),
                 constant_values=neg)
    ee = xp[:, 0::2, 0::2, :]
    eo = xp[:, 0::2, 1::2, :]
    oe = xp[:, 1::2, 0::2, :]
    oo = xp[:, 1::2, 1::2, :]
    fn = _build_maxpool(n, hp // 2, wp // 2, c, ho, wo, x.dtype)
    return fn(ee, eo, oe, oo)


# ----------------------------------------------------------------------------
# Global average pool (AdaptiveAvgPool2d((1,1)))
# ----------------------------------------------------------------------------

def _avgpool_kernel(x_ref, o_ref, *, inv):
    s = jnp.sum(x_ref[0].astype(jnp.float32), axis=0, keepdims=True)
    o_ref[0] = (s * inv).astype(o_ref.dtype)


@functools.lru_cache(maxsize=None)
def _build_avgpool(n, m, c):
    return pl.pallas_call(
        functools.partial(_avgpool_kernel, inv=1.0 / m),
        out_shape=jax.ShapeDtypeStruct((n, 1, c), jnp.float32),
        grid=(n,),
        in_specs=[pl.BlockSpec((1, m, c), lambda i: (i, 0, 0))],
        out_specs=pl.BlockSpec((1, 1, c), lambda i: (i, 0, 0)),
        compiler_params=pltpu.CompilerParams(
            dimension_semantics=("parallel",),
            vmem_limit_bytes=_VMEM_LIMIT),
    )


def global_avgpool(x):
    n, h, w, c = x.shape
    out = _build_avgpool(n, h * w, c)(x.reshape(n, h * w, c))
    return out.reshape(n, 1, 1, c)


# ----------------------------------------------------------------------------
# ResNet-152 parameters (deterministic init) and forward pass
# ----------------------------------------------------------------------------

def make_conv_bn(key, cout, cin, kh, kw):
    fan_in = cin * kh * kw
    w = jax.random.normal(key, (kh * kw, cin, cout), jnp.float32) * (2.0 / fan_in) ** 0.5
    eps = 1e-5
    scale = jnp.full((1, cout), 1.0 / (1.0 + eps) ** 0.5, jnp.float32)   # gamma/sqrt(var+eps)
    bias = jnp.zeros((1, cout), jnp.float32)                             # beta - mean*scale
    return {'w': w.astype(jnp.bfloat16),
            'sb': jnp.concatenate([scale, bias], axis=0),                # merged (2, cout) f32
            'kh': kh, 'kw': kw}


def init_resnet152_params(key):
    keys = iter(jax.random.split(key, 256))
    params = {'conv1': make_conv_bn(next(keys), 64, 3, 7, 7)}
    layer_cfg = [(64, 3, 1), (128, 8, 2), (256, 36, 2), (512, 3, 2)]     # ResNet-152 depths
    expansion = 4
    inplanes = 64
    layers = []
    for width, nblocks, stride in layer_cfg:
        blocks = []
        for bi in range(nblocks):
            s = stride if bi == 0 else 1
            block = {
                'conv1': make_conv_bn(next(keys), width, inplanes, 1, 1),
                'conv2': make_conv_bn(next(keys), width, width, 3, 3),
                'conv3': make_conv_bn(next(keys), width * expansion, width, 1, 1),
                'downsample': (make_conv_bn(next(keys), width * expansion, inplanes, 1, 1)
                               if (s != 1 or inplanes != width * expansion) else None),
                'stride': s,
                'width': width,
            }
            blocks.append(block)
            inplanes = width * expansion
        layers.append(blocks)
    params['layers'] = layers
    return params


def bottleneck_forward(x, block):
    s = block['stride']
    n, h, w, _ = x.shape
    if s == 1 and block['downsample'] is None and h * w <= _FUSE_MAX_PIXELS:
        return fused_bottleneck(x, block)                    # single fused Pallas kernel
    out = conv_bn(x, block['conv1'], stride=1, padding=0, relu=True)
    out = conv_bn(out, block['conv2'], stride=s, padding=1, relu=True)
    if block['downsample'] is not None:
        identity = conv_bn(x, block['downsample'], stride=s, padding=0, relu=False)
    else:
        identity = x
    # residual add + ReLU fused into conv3's GEMM epilogue
    return conv_bn(out, block['conv3'], stride=1, padding=0, relu=True, residual=identity)


def resnet152_forward(x_nchw, params, get_ha=False):
    x = jnp.transpose(x_nchw, (0, 2, 3, 1)).astype(jnp.bfloat16)        # NCHW -> NHWC bf16
    x = conv_bn(x, params['conv1'], stride=2, padding=3, relu=True)     # conv1 + bn1 + relu
    x = maxpool_3x3_s2(x)                                               # maxpool
    feats = []
    for blocks in params['layers']:                                     # layer1 .. layer4
        for block in blocks:
            x = bottleneck_forward(x, block)
        feats.append(x)
    pool = global_avgpool(feats[-1])                                    # avgpool
    pool = jnp.transpose(pool, (0, 3, 1, 2)).astype(jnp.float32)        # (N, 2048, 1, 1)
    if get_ha:
        feats = tuple(jnp.transpose(f, (0, 3, 1, 2)).astype(jnp.float32) for f in feats)
        return feats + (pool,)
    return pool


if __name__ == "__main__":
    key = jax.random.PRNGKey(0)
    pkey, xkey = jax.random.split(key)
    params = init_resnet152_params(pkey)

    # Small input consistent with the module: NCHW, 3 input channels.
    x = jax.random.normal(xkey, (2, 3, 32, 32), jnp.float32)

    b1, b2, b3, b4, pool = resnet152_forward(x, params, get_ha=True)
    jax.block_until_ready((b1, b2, b3, b4, pool))

    assert b1.shape == (2, 256, 8, 8), b1.shape
    assert b2.shape == (2, 512, 4, 4), b2.shape
    assert b3.shape == (2, 1024, 2, 2), b3.shape
    assert b4.shape == (2, 2048, 1, 1), b4.shape
    assert pool.shape == (2, 2048, 1, 1), pool.shape
    assert pool.dtype == jnp.float32
    assert bool(jnp.isfinite(pool).all())

    print("KERNEL_OK")
</pallas_src>

<mosaic_0001>
module attributes {stable_mosaic.version = 11 : i64} {
  func.func @_tap_conv_kernel(%arg0: i32, %arg1: i32, %arg2: memref<1x608x21xbf16, #tpu.memory_space<vmem>>, %arg3: memref<7x21x64xbf16, #tpu.memory_space<vmem>>, %arg4: memref<2x64xf32, #tpu.memory_space<vmem>>, %arg5: memref<1x256x64xbf16, #tpu.memory_space<vmem>>) attributes {dimension_semantics = [#tpu.dimension_semantics<parallel>, #tpu.dimension_semantics<parallel>], iteration_bounds = array<i64: 1, 2>, scalar_prefetch = 0 : i64, scratch_operands = 0 : i64, tpu.core_type = #tpu.core_type<tc>, window_params = [{transform_indices = @transform_0, window_bounds = array<i64: 1, 608, 21>}, {transform_indices = @transform_1, window_bounds = array<i64: 7, 21, 64>}, {transform_indices = @transform_2, window_bounds = array<i64: 2, 64>}, {transform_indices = @transform_3, window_bounds = array<i64: 1, 256, 64>}]} {
    %cst = arith.constant 0.000000e+00 : f32
    %0 = vector.broadcast %cst : f32 to vector<256x64xf32>
    %c0 = arith.constant 0 : index
    %c0_0 = arith.constant 0 : index
    %c0_1 = arith.constant 0 : index
    %1 = vector.load %arg2[%c0, %c0_0, %c0_1] : memref<1x608x21xbf16, #tpu.memory_space<vmem>>, vector<1x256x21xbf16>
    %2 = vector.shape_cast %1 : vector<1x256x21xbf16> to vector<256x21xbf16>
    %c0_2 = arith.constant 0 : index
    %c0_3 = arith.constant 0 : index
    %c0_4 = arith.constant 0 : index
    %3 = vector.load %arg3[%c0_2, %c0_3, %c0_4] : memref<7x21x64xbf16, #tpu.memory_space<vmem>>, vector<1x21x64xbf16>
    %4 = vector.shape_cast %3 : vector<1x21x64xbf16> to vector<21x64xbf16>
    %cst_5 = arith.constant dense<0.000000e+00> : vector<256x64xf32>
    %5 = tpu.matmul %2, %4, %cst_5 {dimension_numbers = #tpu.dot_dimension_numbers<[1], [0], [0], [1], [0, 0, 1, 1], [], []>} : vector<256x21xbf16>, vector<21x64xbf16>, vector<256x64xf32> -> vector<256x64xf32>
    %6 = arith.addf %0, %5 : vector<256x64xf32>
    %c0_6 = arith.constant 0 : index
    %c304 = arith.constant 304 : index
    %c0_7 = arith.constant 0 : index
    %7 = vector.load %arg2[%c0_6, %c304, %c0_7] : memref<1x608x21xbf16, #tpu.memory_space<vmem>>, vector<1x256x21xbf16>
    %8 = vector.shape_cast %7 : vector<1x256x21xbf16> to vector<256x21xbf16>
    %c1 = arith.constant 1 : index
    %c0_8 = arith.constant 0 : index
    %c0_9 = arith.constant 0 : index
    %9 = vector.load %arg3[%c1, %c0_8, %c0_9] : memref<7x21x64xbf16, #tpu.memory_space<vmem>>, vector<1x21x64xbf16>
    %10 = vector.shape_cast %9 : vector<1x21x64xbf16> to vector<21x64xbf16>
    %cst_10 = arith.constant dense<0.000000e+00> : vector<256x64xf32>
    %11 = tpu.matmul %8, %10, %cst_10 {dimension_numbers = #tpu.dot_dimension_numbers<[1], [0], [0], [1], [0, 0, 1, 1], [], []>} : vector<256x21xbf16>, vector<21x64xbf16>, vector<256x64xf32> -> vector<256x64xf32>
    %12 = arith.addf %6, %11 : vector<256x64xf32>
    %c0_11 = arith.constant 0 : index
    %c16 = arith.constant 16 : index
    %c0_12 = arith.constant 0 : index
    %13 = vector.load %arg2[%c0_11, %c16, %c0_12] : memref<1x608x21xbf16, #tpu.memory_space<vmem>>, vector<1x256x21xbf16>
    %14 = vector.shape_cast %13 : vector<1x256x21xbf16> to vector<256x21xbf16>
    %c2 = arith.constant 2 : index
    %c0_13 = arith.constant 0 : index
    %c0_14 = arith.constant 0 : index
    %15 = vector.load %arg3[%c2, %c0_13, %c0_14] : memref<7x21x64xbf16, #tpu.memory_space<vmem>>, vector<1x21x64xbf16>
    %16 = vector.shape_cast %15 : vector<1x21x64xbf16> to vector<21x64xbf16>
    %cst_15 = arith.constant dense<0.000000e+00> : vector<256x64xf32>
    %17 = tpu.matmul %14, %16, %cst_15 {dimension_numbers = #tpu.dot_dimension_numbers<[1], [0], [0], [1], [0, 0, 1, 1], [], []>} : vector<256x21xbf16>, vector<21x64xbf16>, vector<256x64xf32> -> vector<256x64xf32>
    %18 = arith.addf %12, %17 : vector<256x64xf32>
    %c0_16 = arith.constant 0 : index
    %c320 = arith.constant 320 : index
    %c0_17 = arith.constant 0 : index
    %19 = vector.load %arg2[%c0_16, %c320, %c0_17] : memref<1x608x21xbf16, #tpu.memory_space<vmem>>, vector<1x256x21xbf16>
    %20 = vector.shape_cast %19 : vector<1x256x21xbf16> to vector<256x21xbf16>
    %c3 = arith.constant 3 : index
    %c0_18 = arith.constant 0 : index
    %c0_19 = arith.constant 0 : index
    %21 = vector.load %arg3[%c3, %c0_18, %c0_19] : memref<7x21x64xbf16, #tpu.memory_space<vmem>>, vector<1x21x64xbf16>
    %22 = vector.shape_cast %21 : vector<1x21x64xbf16> to vector<21x64xbf16>
    %cst_20 = arith.constant dense<0.000000e+00> : vector<256x64xf32>
    %23 = tpu.matmul %20, %22, %cst_20 {dimension_numbers = #tpu.dot_dimension_numbers<[1], [0], [0], [1], [0, 0, 1, 1], [], []>} : vector<256x21xbf16>, vector<21x64xbf16>, vector<256x64xf32> -> vector<256x64xf32>
    %24 = arith.addf %18, %23 : vector<256x64xf32>
    %c0_21 = arith.constant 0 : index
    %c32 = arith.constant 32 : index
    %c0_22 = arith.constant 0 : index
    %25 = vector.load %arg2[%c0_21, %c32, %c0_22] : memref<1x608x21xbf16, #tpu.memory_space<vmem>>, vector<1x256x21xbf16>
    %26 = vector.shape_cast %25 : vector<1x256x21xbf16> to vector<256x21xbf16>
    %c4 = arith.constant 4 : index
    %c0_23 = arith.constant 0 : index
    %c0_24 = arith.constant 0 : index
    %27 = vector.load %arg3[%c4, %c0_23, %c0_24] : memref<7x21x64xbf16, #tpu.memory_space<vmem>>, vector<1x21x64xbf16>
    %28 = vector.shape_cast %27 : vector<1x21x64xbf16> to vector<21x64xbf16>
    %cst_25 = arith.constant dense<0.000000e+00> : vector<256x64xf32>
    %29 = tpu.matmul %26, %28, %cst_25 {dimension_numbers = #tpu.dot_dimension_numbers<[1], [0], [0], [1], [0, 0, 1, 1], [], []>} : vector<256x21xbf16>, vector<21x64xbf16>, vector<256x64xf32> -> vector<256x64xf32>
    %30 = arith.addf %24, %29 : vector<256x64xf32>
    %c0_26 = arith.constant 0 : index
    %c336 = arith.constant 336 : index
    %c0_27 = arith.constant 0 : index
    %31 = vector.load %arg2[%c0_26, %c336, %c0_27] : memref<1x608x21xbf16, #tpu.memory_space<vmem>>, vector<1x256x21xbf16>
    %32 = vector.shape_cast %31 : vector<1x256x21xbf16> to vector<256x21xbf16>
    %c5 = arith.constant 5 : index
    %c0_28 = arith.constant 0 : index
    %c0_29 = arith.constant 0 : index
    %33 = vector.load %arg3[%c5, %c0_28, %c0_29] : memref<7x21x64xbf16, #tpu.memory_space<vmem>>, vector<1x21x64xbf16>
    %34 = vector.shape_cast %33 : vector<1x21x64xbf16> to vector<21x64xbf16>
    %cst_30 = arith.constant dense<0.000000e+00> : vector<256x64xf32>
    %35 = tpu.matmul %32, %34, %cst_30 {dimension_numbers = #tpu.dot_dimension_numbers<[1], [0], [0], [1], [0, 0, 1, 1], [], []>} : vector<256x21xbf16>, vector<21x64xbf16>, vector<256x64xf32> -> vector<256x64xf32>
    %36 = arith.addf %30, %35 : vector<256x64xf32>
    %c0_31 = arith.constant 0 : index
    %c48 = arith.constant 48 : index
    %c0_32 = arith.constant 0 : index
    %37 = vector.load %arg2[%c0_31, %c48, %c0_32] : memref<1x608x21xbf16, #tpu.memory_space<vmem>>, vector<1x256x21xbf16>
    %38 = vector.shape_cast %37 : vector<1x256x21xbf16> to vector<256x21xbf16>
    %c6 = arith.constant 6 : index
    %c0_33 = arith.constant 0 : index
    %c0_34 = arith.constant 0 : index
    %39 = vector.load %arg3[%c6, %c0_33, %c0_34] : memref<7x21x64xbf16, #tpu.memory_space<vmem>>, vector<1x21x64xbf16>
    %40 = vector.shape_cast %39 : vector<1x21x64xbf16> to vector<21x64xbf16>
    %cst_35 = arith.constant dense<0.000000e+00> : vector<256x64xf32>
    %41 = tpu.matmul %38, %40, %cst_35 {dimension_numbers = #tpu.dot_dimension_numbers<[1], [0], [0], [1], [0, 0, 1, 1], [], []>} : vector<256x21xbf16>, vector<21x64xbf16>, vector<256x64xf32> -> vector<256x64xf32>
    %42 = arith.addf %36, %41 : vector<256x64xf32>
    %c0_36 = arith.constant 0 : index
    %c0_37 = arith.constant 0 : index
    %43 = vector.load %arg4[%c0_36, %c0_37] : memref<2x64xf32, #tpu.memory_space<vmem>>, vector<1x64xf32>
    %44 = vector.broadcast %43 : vector<1x64xf32> to vector<256x64xf32>
    %45 = arith.mulf %42, %44 : vector<256x64xf32>
    %c1_38 = arith.constant 1 : index
    %c0_39 = arith.constant 0 : index
    %46 = vector.load %arg4[%c1_38, %c0_39] : memref<2x64xf32, #tpu.memory_space<vmem>>, vector<1x64xf32>
    %47 = vector.broadcast %46 : vector<1x64xf32> to vector<256x64xf32>
    %48 = arith.addf %45, %47 : vector<256x64xf32>
    %cst_40 = arith.constant 0.000000e+00 : f32
    %49 = vector.broadcast %cst_40 : f32 to vector<256x64xf32>
    %50 = arith.maximumf %48, %49 : vector<256x64xf32>
    %51 = arith.truncf %50 : vector<256x64xf32> to vector<256x64xbf16>
    %c0_41 = arith.constant 0 : index
    %c0_42 = arith.constant 0 : index
    %c0_43 = arith.constant 0 : index
    %52 = vector.load %arg5[%c0_41, %c0_42, %c0_43] : memref<1x256x64xbf16, #tpu.memory_space<vmem>>, vector<1x256x64xbf16>
    %53 = vector.shape_cast %52 : vector<1x256x64xbf16> to vector<256x64xbf16>
    %54 = vector.shape_cast %51 : vector<256x64xbf16> to vector<1x256x64xbf16>
    tpu.vector_store %arg5[%c0_41, %c0_42, %c0_43], %54 {strides = array<i32>} : memref<1x256x64xbf16, #tpu.memory_space<vmem>>, vector<1x256x64xbf16>,
    return
  }
  func.func @transform_0(%arg0: i32, %arg1: i32) -> (i32, i32, i32) {
    %c0_i32 = arith.constant 0 : i32
    %c0_i32_0 = arith.constant 0 : i32
    %c0_i32_1 = arith.constant 0 : i32
    return %arg1, %c0_i32, %c0_i32_0 : i32, i32, i32
  }
  func.func @transform_1(%arg0: i32, %arg1: i32) -> (i32, i32, i32) {
    %c0_i32 = arith.constant 0 : i32
    %c0_i32_0 = arith.constant 0 : i32
    %c0_i32_1 = arith.constant 0 : i32
    return %c0_i32, %c0_i32_0, %arg0 : i32, i32, i32
  }
  func.func @transform_2(%arg0: i32, %arg1: i32) -> (i32, i32) {
    %c0_i32 = arith.constant 0 : i32
    %c0_i32_0 = arith.constant 0 : i32
    return %c0_i32, %arg0 : i32, i32
  }
  func.func @transform_3(%arg0: i32, %arg1: i32) -> (i32, i32, i32) {
    %c0_i32 = arith.constant 0 : i32
    %c0_i32_0 = arith.constant 0 : i32
    return %arg1, %c0_i32, %arg0 : i32, i32, i32
  }
}

</mosaic_0001>

<bundles_post_ra>
// kernel: tpu_custom_call.1
= control target key start
LH: loop header
LB: loop body
LE: loop exit
PB: predicated region body
PF: predicated region fallthrough
CT: control target
= control target key end

     0   :  { %s4230_s12 = smov 0   ;;  %s4232_s13 = smov 0   ;;  %s4725_s0 = inlined_call_operand.vmem [shape: bf16[2,608,21], index: 0, kind: input, shape index: {}]   ;;  %s4726_s1 = inlined_call_operand.vmem [shape: bf16[7,21,64], index: 1, kind: input, shape index: {}]   ;;  %s4727_s2 = inlined_call_operand.vmem [shape: f32[2,64], index: 2, kind: input, shape index: {}]   ;;  %s4728_s3 = inlined_call_operand.vmem [shape: bf16[2,256,64], index: 3, kind: output, shape index: {}]  }
   0x1   :  { %s4234_s14 = smov 0  }
   0x2 LB: > { %s22_s15 = sadd.s32 1, %s4203_s13  ;;  %p3130_p0 = scmp.ge.s32.totalorder %s4207_s14, 1  ;;  %s4207_s14 = sphi %s4234_s14, %s13_s14   ;;  %s4203_s13 = sphi %s4232_s13, %s4730_s13   ;;  %s4199_s12 = sphi %s4230_s12, %s4729_s12  }
   0x3   : > { %p23_p1 = scmp.ge.s32.totalorder %s22_s15, 2  ;;  %p169_p2 = scmp.lt.s32.totalorder %s4207_s14, 3 }
   0x5   : > { %s4732_s15 = smov (%p23_p1, %s22_s15), 0  ;;  %p170_p3 = pnand %p3130_p0, %p169_p2 }
   0x6   : > { %v4059_v0 = vld [vmem:[%s4726_s1 + $0xc] sm:$0xff] (!%p170_p3)   ;;  %vm435_vm0 = vcmask (!%p170_p3), 1041408   ;;  %v4254_v1 = vld [vmem:[%s4726_s1 + $0x24] sm:$0xff] (!%p170_p3)   ;;  %vm436_vm1 = vcmask (!%p170_p3), 1042432   ;;  %v4209_v3 = vmov (!%p170_p3), 65535   ;;  %p204_p4 = scmp.lt.s32.totalorder (!%p170_p3), %s4199_s12, 1 }
   0x7   : > { %173 = sbr.rel (%p170_p3) target bundleno = 462 (0x1ce), region = 32  ;;  %3585 = vmatprep.subr.bf16.mxu1 (!%p170_p3), %v4059_v0  ;;  %v4061_v2 = vld [vmem:[%s4726_s1 + $0x14] ss:$0 sps:$4 sm:$0x77] (!%p170_p3)   ;;  %3693 = vmatprep.subr.bf16.mxu0 (!%p170_p3), %v4254_v1  ;;  %v437_v4 = vsel (!%p170_p3), %vm435_vm0, 4294967295, %v4209_v3  ;;  %v4066_v7 = vld [vmem:[%s4726_s1] sm:$0xff] (!%p170_p3)  }
   0x8   : > { %3586 = vmatpush3.bf16.msra.mxu1 (!%p170_p3), %v4059_v0  ;;  %v4062_v5 = vld [vmem:[%s4726_s1 + $0x2c] ss:$0 sps:$4 sm:$0x77] (!%p170_p3)   ;;  %3694 = vmatpush3.bf16.msra.mxu0 (!%p170_p3), %v4254_v1  ;;  %v4264_v6 = vsel (!%p170_p3), %vm436_vm1, %v437_v4, 0  ;;  %v4068_v10 = vld [vmem:[%s4726_s1 + $0x30] sm:$0xff] (!%p170_p3)   ;;  %vm386_vm2 = vcmask (!%p170_p3), 171008  }
   0x9   : > { %v440_v8 = vand.u32 (!%p170_p3), %v4061_v2, %v4264_v6  ;;  %v4271_v9 = vand.u32 (!%p170_p3), %v4062_v5, %v4264_v6  ;;  %v4077_v11 = vld [vmem:[%s4726_s1 + $0x38] ss:$0 sps:$4 sm:$0x77] (!%p170_p3)   ;;  %v4085_v12 = vld [vmem:[%s4726_s1 + $0x8] ss:$0 sps:$4 sm:$0x77] (!%p170_p3)  }
   0xa   : > { %v1816_v17 = vand.u32 (!%p170_p3), %v4077_v11, %v4264_v6  ;;  %v741_v19 = vand.u32 (!%p170_p3), %v4085_v12, %v4264_v6  ;;  %v4087_v21 = vld [vmem:[%s4726_s1 + $0x3c] sm:$0xff] (!%p170_p3)   ;;  %v4105_v35 = vld [vmem:[%s4726_s1 + $0x44] ss:$0 sps:$4 sm:$0x77] (!%p170_p3)   ;;  %v4354_v41 = vld [vmem:[%s4726_s1 + $0x48] sm:$0xff] (!%p170_p3)   ;;  %vm2983_vm3 = vcmask (!%p170_p3), 519168  }
   0xb   : > { %3587 = vmatprep.subr.bf16.mxu1 (!%p170_p3), %v440_v8  ;;  %3695 = vmatprep.subr.bf16.mxu0 (!%p170_p3), %v4271_v9  ;;  %v4311_v22 = vld [vmem:[%s4726_s1 + $0x18] sm:$0xff] (!%p170_p3)   ;;  %v2185_v40 = vand.u32 (!%p170_p3), %v4105_v35, %v4264_v6  ;;  %v4121_v54 = vld [vmem:[%s4726_s1 + $0x20] ss:$0 sps:$4 sm:$0x77] (!%p170_p3)  }
   0xc   : > { %3588 = vmatpush3.bf16.msra.mxu1 (!%p170_p3), %v440_v8  ;;  %3696 = vmatpush3.bf16.msra.mxu0 (!%p170_p3), %v4271_v9  ;;  %v1078_v59 = vand.u32 (!%p170_p3), %v4121_v54, %v4264_v6  ;;  %v4140_v11 = vld [vmem:[%s4726_s1 + $0x50] ss:$0 sps:$4 sm:$0x77] (!%p170_p3)  }
   0xd   : > { %3621 = vmatprep.subr.bf16.mxu1 (!%p170_p3), %v4066_v7  ;;  %3729 = vmatprep.subr.bf16.mxu0 (!%p170_p3), %v4068_v10 }
   0xe   : > { %s4734_s12 = smov (!%p204_p4, %s4199_s12), 1 }
   0xf   : > { %s4033_s28 = smul.u32 304, %s4734_s12  ;;  %s3426_s29 = sshll.u32 %s4734_s12, 7 }
  0x10   : > { %s4586_s5 = scalar_lea.vmem %s4728_s3, %s3426_s29 }
  0x11   : > { %s4287_s6 = scalar_lea.vmem %s4725_s0, %s4033_s28 }
  0x12   : > { %v4063_v13 = vld [vmem:[%s4287_s6 + $0x98] sm:$0xff]   ;;  %v4064_v14 = vld [vmem:[%s4287_s6 + $0xa0] sm:$0xff]   ;;  %v4067_v16 = vld [vmem:[%s4287_s6 + $0xa8] sm:$0xff]  }
  0x13   : > { %3589 = vmatprep.mubr.msk.bf16.mxu1 %vm386_vm2, %v4063_v13  ;;  %v4065_v15 = vld [vmem:[%s4287_s6 + $0xa0] sm:$0xff]   ;;  %3697 = vmatprep.mubr.msk.bf16.mxu0 %vm386_vm2, %v4064_v14  ;;  %v4069_v18 = vld [vmem:[%s4287_s6 + $0xa8] sm:$0xff]   ;;  %v4070_v20 = vld [vmem:[%s4287_s6 + $0xb0] sm:$0xff]  }
  0x14   : > { %3590 = vmatmul.mubr.msk.bf16.vlgmr.msra.gmra.mrb[0].mxu1 %vm386_vm2, %v4065_v15  ;;  %3698 = vmatmul.mubr.msk.bf16.vlgmr.msra.gmra.mrb[0].mxu0 %vm386_vm2, %v4067_v16  ;;  %v4071_v23 = vld [vmem:[%s4287_s6 + $0xb0] sm:$0xff]   ;;  %v4072_v24 = vld [vmem:[%s4287_s6 + $0xb8] sm:$0xff]   ;;  %v4074_v26 = vld [vmem:[%s4287_s6 + $0xc0] sm:$0xff]   ;;  %v2554_v16 = vand.u32 %v4140_v11, %v4264_v6 }
  0x15   : > { %3622 = vmatpush3.bf16.msra.mxu1 %v4066_v7  ;;  %3730 = vmatpush3.bf16.msra.mxu0 %v4068_v10  ;;  %v4073_v25 = vld [vmem:[%s4287_s6 + $0xb8] sm:$0xff]   ;;  %v4075_v27 = vld [vmem:[%s4287_s6 + $0xc0] sm:$0xff]   ;;  %v4076_v28 = vld [vmem:[%s4287_s6 + $0xc8] sm:$0xff]  }
  0x16   : > { %3593 = vmatprep.mubr.msk.bf16.mxu1 %vm386_vm2, %v4069_v18  ;;  %3701 = vmatprep.mubr.msk.bf16.mxu0 %vm386_vm2, %v4070_v20  ;;  %v4078_v29 = vld [vmem:[%s4287_s6 + $0xc8] sm:$0xff]   ;;  %v4079_v30 = vld [vmem:[%s4287_s6 + $0xd0] sm:$0xff]   ;;  %v4081_v32 = vld [vmem:[%s4287_s6 + $0xd8] sm:$0xff]  }
  0x17   : > { %3731 = vmatprep.subr.bf16.mxu0 %v1816_v17  ;;  %3623 = vmatprep.subr.bf16.mxu1 %v741_v19  ;;  %v4080_v31 = vld [vmem:[%s4287_s6 + $0xd0] sm:$0xff]   ;;  %v4082_v33 = vld [vmem:[%s4287_s6 + $0xd8] sm:$0xff]   ;;  %v4084_v36 = vld [vmem:[%s4287_s6 + $0xe0] sm:$0xff]  }
  0x18   : > { %v4083_v34 = vld [vmem:[%s4287_s6 + $0x10] sm:$0xff]   ;;  %v4086_v37 = vld [vmem:[%s4287_s6 + $0x18] sm:$0xff]   ;;  %v4088_v38 = vld [vmem:[%s4287_s6 + $0xe8] sm:$0xff]  }
  0x19   : > { %3624 = vmatpush3.bf16.msra.mxu1 %v741_v19  ;;  %3732 = vmatpush3.bf16.msra.mxu0 %v1816_v17  ;;  %v4089_v39 = vld [vmem:[%s4287_s6 + $0x20] sm:$0xff]   ;;  %v4090_v42 = vld [vmem:[%s4287_s6 + $0xf0] sm:$0xff]   ;;  %v4091_v43 = vld [vmem:[%s4287_s6 + $0x28] sm:$0xff]  }
  0x1a   : > { %3657 = vmatprep.subr.bf16.mxu1 %v4311_v22  ;;  %3765 = vmatprep.subr.bf16.mxu0 %v4087_v21  ;;  %v4092_v44 = vld [vmem:[%s4287_s6 + $0xf8] sm:$0xff]   ;;  %v4093_v45 = vld [vmem:[%s4287_s6 + $0x30] sm:$0xff]   ;;  %v4094_v46 = vld [vmem:[%s4287_s6 + $0x100] sm:$0xff]  }
  0x1b   : > { %v4095_v47 = vld [vmem:[%s4287_s6 + $0x38] sm:$0xff]   ;;  %v4096_v48 = vld [vmem:[%s4287_s6 + $0x108] sm:$0xff]   ;;  %v4097_v49 = vld [vmem:[%s4287_s6 + $0x40] sm:$0xff]  }
  0x1c   : > { %3594 = vmatmul.mubr.msk.bf16.gmra.mrb[4].mxu1 %vm386_vm2, %v4071_v23  ;;  %3702 = vmatmul.mubr.msk.bf16.gmra.mrb[4].mxu0 %vm386_vm2, %v4072_v24  ;;  %v4098_v50 = vld [vmem:[%s4287_s6 + $0x110] sm:$0xff]   ;;  %v4099_v51 = vld [vmem:[%s4287_s6 + $0x48] sm:$0xff]   ;;  %v4100_v52 = vld [vmem:[%s4287_s6] sm:$0xff]  }
  0x1d   : > { %3597 = vmatprep.mubr.msk.bf16.mxu1 %vm386_vm2, %v4073_v25  ;;  %3705 = vmatprep.mubr.msk.bf16.mxu0 %vm386_vm2, %v4074_v26  ;;  %v4101_v53 = vld [vmem:[%s4287_s6 + $0x50] sm:$0xff]   ;;  %v4102_v55 = vld [vmem:[%s4287_s6 + $0x8] sm:$0xff]   ;;  %v4104_v56 = vld [vmem:[%s4287_s6 + $0x58] sm:$0xff]  }
  0x1e   : > { %v4106_v57 = vld [vmem:[%s4287_s6 + $0x10] sm:$0xff]   ;;  %v4107_v58 = vld [vmem:[%s4287_s6 + $0x60] sm:$0xff]   ;;  %v4108_v60 = vld [vmem:[%s4287_s6 + $0x18] sm:$0xff]  }
  0x1f   : > { %v4109_v61 = vld [vmem:[%s4287_s6 + $0x68] sm:$0xff]   ;;  %v4110_v62 = vld [vmem:[%s4287_s6 + $0x20] sm:$0xff]   ;;  %v4111_v63 = vld [vmem:[%s4287_s6 + $0x70] sm:$0xff]  }
  0x20   : > { %v4112_v0 = vld [vmem:[%s4287_s6 + $0x28] sm:$0xff]   ;;  %v4113_v2 = vld [vmem:[%s4287_s6 + $0x78] sm:$0xff]   ;;  %v4114_v3 = vld [vmem:[%s4287_s6 + $0x30] sm:$0xff]  }
  0x21   : > { %v4115_v4 = vld [vmem:[%s4287_s6 + $0x80] sm:$0xff]   ;;  %v4116_v5 = vld [vmem:[%s4287_s6 + $0x38] sm:$0xff]   ;;  %v4117_v7 = vld [vmem:[%s4287_s6 + $0x88] sm:$0xff]  }
  0x22   : > { %v4118_v8 = vld [vmem:[%s4287_s6 + $0x40] sm:$0xff]   ;;  %v4119_v10 = vld [vmem:[%s4287_s6 + $0xa8] sm:$0xff]   ;;  %v4122_v13 = vld [vmem:[%s4287_s6 + $0xb0] sm:$0xff]  }
  0x23   : > { %v4120_v12 = vld [vmem:[%s4287_s6 + $0x48] sm:$0xff]   ;;  %v4124_v14 = vld [vmem:[%s4287_s6 + $0x50] sm:$0xff]   ;;  %v4125_v15 = vld [vmem:[%s4287_s6 + $0xb8] sm:$0xff]  }
  0x24   : > { %3598 = vmatmul.mubr.msk.bf16.gmra.mrb[8].mxu1 %vm386_vm2, %v4075_v27  ;;  %3706 = vmatmul.mubr.msk.bf16.gmra.mrb[8].mxu0 %vm386_vm2, %v4076_v28  ;;  %v4126_v17 = vld [vmem:[%s4287_s6 + $0x58] sm:$0xff]   ;;  %v4127_v18 = vld [vmem:[%s4287_s6 + $0xc0] sm:$0xff]   ;;  %v4129_v6 = vld [vmem:[%s4287_s6 + $0xc8] sm:$0xff]  }
  0x25   : > { %3601 = vmatprep.mubr.msk.bf16.mxu1 %vm386_vm2, %v4078_v29  ;;  %3709 = vmatprep.mubr.msk.bf16.mxu0 %vm386_vm2, %v4079_v30  ;;  %v4128_v19 = vld [vmem:[%s4287_s6 + $0x60] sm:$0xff]   ;;  %v4130_v20 = vld [vmem:[%s4287_s6 + $0x68] sm:$0xff]   ;;  %v4133_v23 = vld [vmem:[%s4287_s6 + $0xd8] sm:$0xff]  }
  0x26   : > { %v4134_v24 = vld [vmem:[%s4287_s6 + $0x78] sm:$0xff]   ;;  %v4135_v25 = vld [vmem:[%s4287_s6 + $0xe0] sm:$0xff]   ;;  %v4136_v26 = vld [vmem:[%s4287_s6 + $0x8] sm:$0xff]  }
  0x27   : > { %v4137_v27 = vld [vmem:[%s4287_s6 + $0xe8] sm:$0xff]   ;;  %v4138_v28 = vld [vmem:[%s4287_s6 + $0x10] sm:$0xff]   ;;  %v4141_v30 = vld [vmem:[%s4287_s6 + $0x18] sm:$0xff]  }
  0x28   : > { %v4139_v29 = vld [vmem:[%s4287_s6 + $0xf0] sm:$0xff]   ;;  %v4146_v35 = vld [vmem:[%s4287_s6 + $0x108] sm:$0xff]   ;;  %v4167_v54 = vld [vmem:[%s4287_s6 + $0x80] sm:$0xff]  }
  0x2c   : > { %3602 = vmatmul.mubr.msk.bf16.gmra.mrb[12].mxu1 %vm386_vm2, %v4080_v31  ;;  %3710 = vmatmul.mubr.msk.bf16.gmra.mrb[12].mxu0 %vm386_vm2, %v4081_v32  ;;  %v4142_v31 = vld [vmem:[%s4287_s6 + $0xf8] sm:$0xff]   ;;  %v4143_v32 = vld [vmem:[%s4287_s6 + $0x20] sm:$0xff]  }
  0x2d   : > { %3605 = vmatprep.mubr.msk.bf16.mxu1 %vm386_vm2, %v4082_v33  ;;  %3733 = vmatprep.mubr.msk.bf16.mxu0 %vm386_vm2, %v4083_v34  ;;  %v4144_v33 = vld [vmem:[%s4287_s6 + $0x100] sm:$0xff]   ;;  %v4145_v34 = vld [vmem:[%s4287_s6 + $0x28] sm:$0xff]  }
  0x34   : > { %3606 = vmatmul.mubr.msk.bf16.gmra.mrb[16].mxu1 %vm386_vm2, %v4084_v36  ;;  %3734 = vmatmul.mubr.msk.bf16.vlgmr.msra.gmra.mrb[0].mxu0 %vm386_vm2, %v4086_v37  ;;  %v4148_v36 = vld [vmem:[%s4287_s6 + $0x110] sm:$0xff]   ;;  %v4149_v37 = vld [vmem:[%s4287_s6 + $0x38] sm:$0xff]  }
  0x35   : > { %3609 = vmatprep.mubr.msk.bf16.mxu1 %vm386_vm2, %v4088_v38  ;;  %3766 = vmatpush3.bf16.msra.mxu0 %v4087_v21  ;;  %v4131_v21 = vld [vmem:[%s4287_s6 + $0xd0] sm:$0xff]   ;;  %v4150_v38 = vld [vmem:[%s4287_s6 + $0x118] sm:$0xff]  }
  0x36   : > { %3737 = vmatprep.mubr.msk.bf16.mxu0 %vm386_vm2, %v4089_v39  ;;  %3767 = vmatprep.subr.bf16.mxu0 %v2185_v40  ;;  %v4152_v39 = vld [vmem:[%s4287_s6 + $0x120] sm:$0xff]  }
  0x39   : > { %3768 = vmatpush3.bf16.msra.mxu0 %v2185_v40  ;;  %v4153_v40 = vld [vmem:[%s4287_s6 + $0x48] sm:$0xff]  }
  0x3a   : > { %3801 = vmatprep.subr.bf16.mxu0 %v4354_v41 }
  0x3c   : > { %3610 = vmatmul.mubr.msk.bf16.gmra.mrb[20].mxu1 %vm386_vm2, %v4090_v42  ;;  %3738 = vmatmul.mubr.msk.bf16.gmra.mrb[4].mxu0 %vm386_vm2, %v4091_v43  ;;  %v4155_v42 = vld [vmem:[%s4287_s6 + $0x50] sm:$0xff]   ;;  %v4156_v43 = vld [vmem:[%s4287_s6 + $0x20] sm:$0xff]  }
  0x3d   : > { %3613 = vmatprep.mubr.msk.bf16.mxu1 %vm386_vm2, %v4092_v44  ;;  %3741 = vmatprep.mubr.msk.bf16.mxu0 %vm386_vm2, %v4093_v45  ;;  %v4157_v44 = vld [vmem:[%s4287_s6 + $0x58] sm:$0xff]   ;;  %v4158_v45 = vld [vmem:[%s4287_s6 + $0x28] sm:$0xff]  }
  0x44   : > { %3614 = vmatmul.mubr.msk.bf16.gmra.mrb[24].mxu1 %vm386_vm2, %v4094_v46  ;;  %3742 = vmatmul.mubr.msk.bf16.gmra.mrb[8].mxu0 %vm386_vm2, %v4095_v47  ;;  %v4159_v46 = vld [vmem:[%s4287_s6 + $0x60] sm:$0xff]   ;;  %v4160_v47 = vld [vmem:[%s4287_s6 + $0x30] sm:$0xff]  }
  0x45   : > { %3617 = vmatprep.mubr.msk.bf16.mxu1 %vm386_vm2, %v4096_v48  ;;  %3745 = vmatprep.mubr.msk.bf16.mxu0 %vm386_vm2, %v4097_v49  ;;  %v4161_v48 = vld [vmem:[%s4287_s6 + $0x68] sm:$0xff]   ;;  %v4162_v49 = vld [vmem:[%s4287_s6 + $0x38] sm:$0xff]  }
  0x4c   : > { %3618 = vmatmul.mubr.msk.bf16.gmra.mrb[28].mxu1 %vm386_vm2, %v4098_v50  ;;  %3746 = vmatmul.mubr.msk.bf16.gmra.mrb[12].mxu0 %vm386_vm2, %v4099_v51  ;;  %v4163_v50 = vld [vmem:[%s4287_s6 + $0x70] sm:$0xff]   ;;  %v4164_v51 = vld [vmem:[%s4287_s6 + $0x40] sm:$0xff]  }
  0x4d   : > { %3625 = vmatprep.mubr.msk.bf16.mxu1 %vm386_vm2, %v4100_v52  ;;  %3749 = vmatprep.mubr.msk.bf16.mxu0 %vm386_vm2, %v4101_v53  ;;  %v4165_v52 = vld [vmem:[%s4287_s6 + $0x78] sm:$0xff]   ;;  %v4166_v53 = vld [vmem:[%s4287_s6 + $0x48] sm:$0xff]  }
  0x54   : > { %3626 = vmatmul.mubr.msk.bf16.vlgmr.msra.gmra.mrb[0].mxu1 %vm386_vm2, %v4102_v55  ;;  %3750 = vmatmul.mubr.msk.bf16.gmra.mrb[16].mxu0 %vm386_vm2, %v4104_v56  ;;  %v4168_v55 = vld [vmem:[%s4287_s6 + $0x50] sm:$0xff]   ;;  %v4169_v56 = vld [vmem:[%s4287_s6 + $0xe0] sm:$0xff]  }
  0x55   : > { %3658 = vmatpush3.bf16.msra.mxu1 %v4311_v22  ;;  %3629 = vmatprep.mubr.msk.bf16.mxu1 %vm386_vm2, %v4106_v57  ;;  %v4132_v22 = vld [vmem:[%s4287_s6 + $0x70] sm:$0xff]   ;;  %v4170_v57 = vld [vmem:[%s4287_s6 + $0x58] sm:$0xff]  }
  0x56   : > { %3753 = vmatprep.mubr.msk.bf16.mxu0 %vm386_vm2, %v4107_v58  ;;  %3659 = vmatprep.subr.bf16.mxu1 %v1078_v59  ;;  %v4171_v58 = vld [vmem:[%s4287_s6 + $0xe8] sm:$0xff]  }
  0x59   : > { %3660 = vmatpush3.bf16.msra.mxu1 %v1078_v59  ;;  %v4172_v59 = vld [vmem:[%s4287_s6 + $0x60] sm:$0xff]  }
  0x5a   : > { %3837 = vmatprep.subr.bf16.mxu1 %v4254_v1 }
  0x5c   : > { %3630 = vmatmul.mubr.msk.bf16.gmra.mrb[4].mxu1 %vm386_vm2, %v4108_v60  ;;  %3754 = vmatmul.mubr.msk.bf16.gmra.mrb[20].mxu0 %vm386_vm2, %v4109_v61  ;;  %v4173_v60 = vld [vmem:[%s4287_s6 + $0xf0] sm:$0xff]   ;;  %v4174_v61 = vld [vmem:[%s4287_s6 + $0x68] sm:$0xff]  }
  0x5d   : > { %3633 = vmatprep.mubr.msk.bf16.mxu1 %vm386_vm2, %v4110_v62  ;;  %3757 = vmatprep.mubr.msk.bf16.mxu0 %vm386_vm2, %v4111_v63  ;;  %v4175_v62 = vld [vmem:[%s4287_s6 + $0xf8] sm:$0xff]   ;;  %v4176_v63 = vld [vmem:[%s4287_s6 + $0x70] sm:$0xff]  }
  0x64   : > { %3634 = vmatmul.mubr.msk.bf16.gmra.mrb[8].mxu1 %vm386_vm2, %v4112_v0  ;;  %3758 = vmatmul.mubr.msk.bf16.gmra.mrb[24].mxu0 %vm386_vm2, %v4113_v2  ;;  %v4177_v0 = vld [vmem:[%s4287_s6 + $0x100] sm:$0xff]   ;;  %v4178_v2 = vld [vmem:[%s4287_s6 + $0x78] sm:$0xff]  }
  0x65   : > { %3637 = vmatprep.mubr.msk.bf16.mxu1 %vm386_vm2, %v4114_v3  ;;  %3761 = vmatprep.mubr.msk.bf16.mxu0 %vm386_vm2, %v4115_v4  ;;  %v4179_v3 = vld [vmem:[%s4287_s6 + $0x108] sm:$0xff]   ;;  %v4180_v4 = vld [vmem:[%s4287_s6 + $0x80] sm:$0xff]  }
  0x6c   : > { %3638 = vmatmul.mubr.msk.bf16.gmra.mrb[12].mxu1 %vm386_vm2, %v4116_v5  ;;  %3762 = vmatmul.mubr.msk.bf16.gmra.mrb[28].mxu0 %vm386_vm2, %v4117_v7  ;;  %v4181_v5 = vld [vmem:[%s4287_s6 + $0x110] sm:$0xff]   ;;  %v4182_v7 = vld [vmem:[%s4287_s6 + $0x88] sm:$0xff]  }
  0x6d   : > { %3641 = vmatprep.mubr.msk.bf16.mxu1 %vm386_vm2, %v4118_v8  ;;  %3769 = vmatprep.mubr.msk.bf16.mxu0 %vm386_vm2, %v4119_v10  ;;  %v4183_v8 = vld [vmem:[%s4287_s6 + $0x118] sm:$0xff]   ;;  %v4184_v10 = vld [vmem:[%s4287_s6 + $0x90] sm:$0xff]  }
  0x74   : > { %3642 = vmatmul.mubr.msk.bf16.gmra.mrb[16].mxu1 %vm386_vm2, %v4120_v12  ;;  %3770 = vmatmul.mubr.msk.bf16.vlgmr.msra.gmra.mrb[0].mxu0 %vm386_vm2, %v4122_v13 }
  0x75   : > { %3645 = vmatprep.mubr.msk.bf16.mxu1 %vm386_vm2, %v4124_v14  ;;  %3802 = vmatpush3.bf16.msra.mxu0 %v4354_v41  ;;  %v4154_v41 = vld [vmem:[%s4287_s6 + $0x18] sm:$0xff]  }
  0x76   : > { %3773 = vmatprep.mubr.msk.bf16.mxu0 %vm386_vm2, %v4125_v15  ;;  %3803 = vmatprep.subr.bf16.mxu0 %v2554_v16 }
  0x79   : > { %3804 = vmatpush3.bf16.msra.mxu0 %v2554_v16 }
  0x7c   : > { %3646 = vmatmul.mubr.msk.bf16.gmra.mrb[20].mxu1 %vm386_vm2, %v4126_v17  ;;  %3774 = vmatmul.mubr.msk.bf16.gmra.mrb[4].mxu0 %vm386_vm2, %v4127_v18 }
  0x7d   : > { %3649 = vmatprep.mubr.msk.bf16.mxu1 %vm386_vm2, %v4128_v19  ;;  %3777 = vmatprep.mubr.msk.bf16.mxu0 %vm386_vm2, %v4129_v6 }
  0x84   : > { %3650 = vmatmul.mubr.msk.bf16.gmra.mrb[24].mxu1 %vm386_vm2, %v4130_v20  ;;  %3778 = vmatmul.mubr.msk.bf16.gmra.mrb[8].mxu0 %vm386_vm2, %v4131_v21 }
  0x85   : > { %3653 = vmatprep.mubr.msk.bf16.mxu1 %vm386_vm2, %v4132_v22  ;;  %3781 = vmatprep.mubr.msk.bf16.mxu0 %vm386_vm2, %v4133_v23 }
  0x8c   : > { %3654 = vmatmul.mubr.msk.bf16.gmra.mrb[28].mxu1 %vm386_vm2, %v4134_v24  ;;  %3782 = vmatmul.mubr.msk.bf16.gmra.mrb[12].mxu0 %vm386_vm2, %v4135_v25 }
  0x8d   : > { %3661 = vmatprep.mubr.msk.bf16.mxu1 %vm386_vm2, %v4136_v26  ;;  %3785 = vmatprep.mubr.msk.bf16.mxu0 %vm386_vm2, %v4137_v27  ;;  %v4568_v27 = vld [vmem:[%s4727_s2] ss:$0 sm:$0xff] }
  0x94   : > { %3662 = vmatmul.mubr.msk.bf16.vlgmr.msra.gmra.mrb[0].mxu1 %vm386_vm2, %v4138_v28  ;;  %3786 = vmatmul.mubr.msk.bf16.gmra.mrb[16].mxu0 %vm386_vm2, %v4139_v29 }
  0x95   : > { %3839 = vmatpush3.bf16.msra.mxu1 %v4254_v1  ;;  %3665 = vmatprep.mubr.msk.bf16.mxu1 %vm386_vm2, %v4141_v30  ;;  %v4147_v1 = vld [vmem:[%s4287_s6 + $0x30] sm:$0xff]   ;;  %v4573_v30 = vld [vmem:[%s4727_s2 + $0x1] ss:$0 sm:$0xff] }
  0x96   : > { %3789 = vmatprep.mubr.msk.bf16.mxu0 %vm386_vm2, %v4142_v31  ;;  %3838 = vmatprep.subr.bf16.mxu1 %v4271_v9 }
  0x99   : > { %3840 = vmatpush3.bf16.msra.mxu1 %v4271_v9  ;;  %v4151_v9 = vld [vmem:[%s4287_s6 + $0x40] sm:$0xff]  }
  0x9c   : > { %3666 = vmatmul.mubr.msk.bf16.gmra.mrb[4].mxu1 %vm386_vm2, %v4143_v32  ;;  %3790 = vmatmul.mubr.msk.bf16.gmra.mrb[20].mxu0 %vm386_vm2, %v4144_v33 }
  0x9d   : > { %3669 = vmatprep.mubr.msk.bf16.mxu1 %vm386_vm2, %v4145_v34  ;;  %3793 = vmatprep.mubr.msk.bf16.mxu0 %vm386_vm2, %v4146_v35 }
  0xa4   : > { %3670 = vmatmul.mubr.msk.bf16.gmra.mrb[8].mxu1 %vm386_vm2, %v4147_v1  ;;  %3794 = vmatmul.mubr.msk.bf16.gmra.mrb[24].mxu0 %vm386_vm2, %v4148_v36 }
  0xa5   : > { %3673 = vmatprep.mubr.msk.bf16.mxu1 %vm386_vm2, %v4149_v37  ;;  %3797 = vmatprep.mubr.msk.bf16.mxu0 %vm386_vm2, %v4150_v38 }
  0xac   : > { %3674 = vmatmul.mubr.msk.bf16.gmra.mrb[12].mxu1 %vm386_vm2, %v4151_v9  ;;  %3798 = vmatmul.mubr.msk.bf16.gmra.mrb[28].mxu0 %vm386_vm2, %v4152_v39 }
  0xad   : > { %3677 = vmatprep.mubr.msk.bf16.mxu1 %vm386_vm2, %v4153_v40  ;;  %3805 = vmatprep.mubr.msk.bf16.mxu0 %vm386_vm2, %v4154_v41 }
  0xb4   : > { %3678 = vmatmul.mubr.msk.bf16.gmra.mrb[16].mxu1 %vm386_vm2, %v4155_v42  ;;  %3806 = vmatmul.mubr.msk.bf16.vlgmr.msra.gmra.mrb[0].mxu0 %vm386_vm2, %v4156_v43 }
  0xb5   : > { %3681 = vmatprep.mubr.msk.bf16.mxu1 %vm386_vm2, %v4157_v44  ;;  %3809 = vmatprep.mubr.msk.bf16.mxu0 %vm386_vm2, %v4158_v45 }
  0xbc   : > { %3682 = vmatmul.mubr.msk.bf16.gmra.mrb[20].mxu1 %vm386_vm2, %v4159_v46  ;;  %3810 = vmatmul.mubr.msk.bf16.gmra.mrb[4].mxu0 %vm386_vm2, %v4160_v47 }
  0xbd   : > { %3685 = vmatprep.mubr.msk.bf16.mxu1 %vm386_vm2, %v4161_v48  ;;  %3813 = vmatprep.mubr.msk.bf16.mxu0 %vm386_vm2, %v4162_v49 }
  0xc4   : > { %3686 = vmatmul.mubr.msk.bf16.gmra.mrb[24].mxu1 %vm386_vm2, %v4163_v50  ;;  %3814 = vmatmul.mubr.msk.bf16.gmra.mrb[8].mxu0 %vm386_vm2, %v4164_v51 }
  0xc5   : > { %3689 = vmatprep.mubr.msk.bf16.mxu1 %vm386_vm2, %v4165_v52  ;;  %3817 = vmatprep.mubr.msk.bf16.mxu0 %vm386_vm2, %v4166_v53 }
  0xcc   : > { %3690 = vmatmul.mubr.msk.bf16.gmra.mrb[28].mxu1 %vm386_vm2, %v4167_v54  ;;  %3818 = vmatmul.mubr.msk.bf16.gmra.mrb[12].mxu0 %vm386_vm2, %v4168_v55 }
  0xcd   : > { %3713 = vmatprep.mubr.msk.bf16.mxu1 %vm386_vm2, %v4169_v56  ;;  %3821 = vmatprep.mubr.msk.bf16.mxu0 %vm386_vm2, %v4170_v57 }
  0xd4   : > { %3714 = vmatmul.mubr.msk.bf16.vlgmr.msra.gmra.mrb[16].mxu1 %vm386_vm2, %v4171_v58  ;;  %3822 = vmatmul.mubr.msk.bf16.gmra.mrb[16].mxu0 %vm386_vm2, %v4172_v59 }
  0xd5   : > { %3717 = vmatprep.mubr.msk.bf16.mxu1 %vm386_vm2, %v4173_v60  ;;  %3825 = vmatprep.mubr.msk.bf16.mxu0 %vm386_vm2, %v4174_v61 }
  0xdc   : > { %3718 = vmatmul.mubr.msk.bf16.gmra.mrb[20].mxu1 %vm386_vm2, %v4175_v62  ;;  %3826 = vmatmul.mubr.msk.bf16.gmra.mrb[20].mxu0 %vm386_vm2, %v4176_v63 }
  0xdd   : > { %3721 = vmatprep.mubr.msk.bf16.mxu1 %vm386_vm2, %v4177_v0  ;;  %3829 = vmatprep.mubr.msk.bf16.mxu0 %vm386_vm2, %v4178_v2 }
  0xe4   : > { %3722 = vmatmul.mubr.msk.bf16.gmra.mrb[24].mxu1 %vm386_vm2, %v4179_v3  ;;  %3830 = vmatmul.mubr.msk.bf16.gmra.mrb[24].mxu0 %vm386_vm2, %v4180_v4 }
  0xe5   : > { %3725 = vmatprep.mubr.msk.bf16.mxu1 %vm386_vm2, %v4181_v5  ;;  %3833 = vmatprep.mubr.msk.bf16.mxu0 %vm386_vm2, %v4182_v7 }
  0xec   : > { %3726 = vmatmul.mubr.msk.bf16.gmra.mrb[28].mxu1 %vm386_vm2, %v4183_v8  ;;  %3834 = vmatmul.mubr.msk.bf16.gmra.mrb[28].mxu0 %vm386_vm2, %v4184_v10 }
 0x167   : > { %v3663_v11 = vpop.f32.mrb[0].mxu1 }
 0x168   : > { %v1114_v12 = vpop.f32.mrb[1].mxu1 }
 0x169   : > { %v3664_v13 = vpop.f32.mrb[2].mxu1 }
 0x16a   : > { %v1117_v14 = vpop.f32.mrb[3].mxu1 }
 0x16f   : > { %v3667_v15 = vpop.f32.mrb[4].mxu1 }
 0x170   : > { %v1130_v16 = vpop.f32.mrb[5].mxu1 }
 0x171   : > { %v3668_v17 = vpop.f32.mrb[6].mxu1 }
 0x172   : > { %v1133_v18 = vpop.f32.mrb[7].mxu1 }
 0x177   : > { %v3671_v19 = vpop.f32.mrb[8].mxu1 }
 0x178   : > { %v4551_v6 = vpop.f32.mrb[9].mxu1 }
 0x179   : > { %v4553_v20 = vpop.f32.mrb[10].mxu1 }
 0x17a   : > { %v4555_v21 = vpop.f32.mrb[11].mxu1 }
 0x17f   : > { %v4557_v22 = vpop.f32.mrb[12].mxu1 }
 0x180   : > { %v4559_v23 = vpop.f32.mrb[13].mxu1 }
 0x181   : > { %v4561_v24 = vpop.f32.mrb[14].mxu1 }
 0x182   : > { %v4563_v25 = vpop.f32.mrb[15].mxu1 }
 0x187   : > { %v3807_v26 = vpop.f32.mrb[0].mxu0 }
 0x188   : > { %v3841_v28 = vadd.f32 %v3807_v26, %v3663_v11  ;;  %v2590_v29 = vpop.f32.mrb[1].mxu0 }
 0x189   : > { %v3842_v31 = vadd.f32 %v2590_v29, %v1114_v12  ;;  %v3808_v32 = vpop.f32.mrb[2].mxu0 }
 0x18a   : > { %v2756_v33 = vmul.f32 %v3841_v28, %v4568_v27  ;;  %v3843_v34 = vadd.f32 %v3808_v32, %v3664_v13  ;;  %v2593_v35 = vpop.f32.mrb[3].mxu0 }
 0x18b   : > { %v2754_v1 = vmul.f32 %v3842_v31, %v4568_v27  ;;  %v3844_v36 = vadd.f32 %v2593_v35, %v1117_v14 }
 0x18c   : > { %v2793_v37 = vadd.f32 %v4573_v30, %v2756_v33  ;;  %v2757_v38 = vmul.f32 %v3843_v34, %v4568_v27 }
 0x18d   : > { %v2791_v9 = vadd.f32 %v4573_v30, %v2754_v1  ;;  %v2755_v39 = vmul.f32 %v3844_v36, %v4568_v27 }
 0x18e   : > { %v2825_v40 = vmax.f32 %v2793_v37, 0.0  ;;  %v2794_v41 = vadd.f32 %v4573_v30, %v2757_v38 }
 0x18f   : > { %v2823_v42 = vmax.f32 %v2791_v9, 0.0  ;;  %v2792_v43 = vadd.f32 %v4573_v30, %v2755_v39  ;;  %v3811_v44 = vpop.f32.mrb[4].mxu0 }
 0x190   : > { %v3429_v45 = vpack.c.bf16 %v2825_v40, %v2825_v40  ;;  %v2826_v46 = vmax.f32 %v2794_v41, 0.0  ;;  %v3845_v47 = vadd.f32 %v3811_v44, %v3667_v15  ;;  %v2606_v48 = vpop.f32.mrb[5].mxu0 }
 0x191   : > { %v3427_v49 = vpack.c.bf16 %v2823_v42, %v2823_v42  ;;  %v2824_v50 = vmax.f32 %v2792_v43, 0.0  ;;  %v3846_v51 = vadd.f32 %v2606_v48, %v1130_v16  ;;  %v3812_v52 = vpop.f32.mrb[6].mxu0 }
 0x192   : > { %2986 = vst.msk [vmem:[%s4586_s5 + $0x8] sm:$0xf] %vm2983_vm3, %v3429_v45  ;;  %v3430_v53 = vpack.c.bf16 %v2826_v46, %v2826_v46  ;;  %v2760_v54 = vmul.f32 %v3845_v47, %v4568_v27  ;;  %v3847_v55 = vadd.f32 %v3812_v52, %v3668_v17  ;;  %v2609_v56 = vpop.f32.mrb[7].mxu0 }
 0x193   : > { %2984 = vst.msk [vmem:[%s4586_s5] sm:$0xf] %vm2983_vm3, %v3427_v49  ;;  %v3428_v57 = vpack.c.bf16 %v2824_v50, %v2824_v50  ;;  %v2758_v58 = vmul.f32 %v3846_v51, %v4568_v27  ;;  %v3848_v59 = vadd.f32 %v2609_v56, %v1133_v18 }
 0x194   : > { %2987 = vst.msk [vmem:[%s4586_s5 + $0xc] sm:$0xf] %vm2983_vm3, %v3430_v53  ;;  %v2797_v60 = vadd.f32 %v4573_v30, %v2760_v54  ;;  %v2761_v61 = vmul.f32 %v3847_v55, %v4568_v27 }
 0x195   : > { %2985 = vst.msk [vmem:[%s4586_s5 + $0x4] sm:$0xf] %vm2983_vm3, %v3428_v57  ;;  %v2795_v62 = vadd.f32 %v4573_v30, %v2758_v58  ;;  %v2759_v63 = vmul.f32 %v3848_v59, %v4568_v27 }
 0x196   : > { %v2829_v0 = vmax.f32 %v2797_v60, 0.0  ;;  %v2798_v2 = vadd.f32 %v4573_v30, %v2761_v61 }
 0x197   : > { %v2827_v3 = vmax.f32 %v2795_v62, 0.0  ;;  %v2796_v4 = vadd.f32 %v4573_v30, %v2759_v63  ;;  %v3815_v5 = vpop.f32.mrb[8].mxu0 }
 0x198   : > { %v3433_v7 = vpack.c.bf16 %v2829_v0, %v2829_v0  ;;  %v2830_v8 = vmax.f32 %v2798_v2, 0.0  ;;  %v3849_v10 = vadd.f32 %v3815_v5, %v3671_v19  ;;  %v2622_v11 = vpop.f32.mrb[9].mxu0 }
 0x199   : > { %v3431_v12 = vpack.c.bf16 %v2827_v3, %v2827_v3  ;;  %v2828_v13 = vmax.f32 %v2796_v4, 0.0  ;;  %v3850_v14 = vadd.f32 %v2622_v11, %v4551_v6  ;;  %v3816_v15 = vpop.f32.mrb[10].mxu0 }
 0x19a   : > { %2990 = vst.msk [vmem:[%s4586_s5 + $0x18] sm:$0xf] %vm2983_vm3, %v3433_v7  ;;  %v3434_v16 = vpack.c.bf16 %v2830_v8, %v2830_v8  ;;  %v2764_v17 = vmul.f32 %v3849_v10, %v4568_v27  ;;  %v3851_v18 = vadd.f32 %v3816_v15, %v4553_v20  ;;  %v2625_v26 = vpop.f32.mrb[11].mxu0 }
 0x19b   : > { %2988 = vst.msk [vmem:[%s4586_s5 + $0x10] sm:$0xf] %vm2983_vm3, %v3431_v12  ;;  %v3432_v28 = vpack.c.bf16 %v2828_v13, %v2828_v13  ;;  %v2762_v19 = vmul.f32 %v3850_v14, %v4568_v27  ;;  %v3852_v29 = vadd.f32 %v2625_v26, %v4555_v21 }
 0x19c   : > { %2991 = vst.msk [vmem:[%s4586_s5 + $0x1c] sm:$0xf] %vm2983_vm3, %v3434_v16  ;;  %v2801_v6 = vadd.f32 %v4573_v30, %v2764_v17  ;;  %v2765_v31 = vmul.f32 %v3851_v18, %v4568_v27 }
 0x19d   : > { %2989 = vst.msk [vmem:[%s4586_s5 + $0x14] sm:$0xf] %vm2983_vm3, %v3432_v28  ;;  %v2799_v32 = vadd.f32 %v4573_v30, %v2762_v19  ;;  %v2763_v20 = vmul.f32 %v3852_v29, %v4568_v27 }
 0x19e   : > { %v2833_v33 = vmax.f32 %v2801_v6, 0.0  ;;  %v2802_v34 = vadd.f32 %v4573_v30, %v2765_v31 }
 0x19f   : > { %v2831_v35 = vmax.f32 %v2799_v32, 0.0  ;;  %v2800_v21 = vadd.f32 %v4573_v30, %v2763_v20  ;;  %v3819_v1 = vpop.f32.mrb[12].mxu0 }
 0x1a0   : > { %v3437_v36 = vpack.c.bf16 %v2833_v33, %v2833_v33  ;;  %v2834_v37 = vmax.f32 %v2802_v34, 0.0  ;;  %v3853_v38 = vadd.f32 %v3819_v1, %v4557_v22  ;;  %v2638_v9 = vpop.f32.mrb[13].mxu0 }
 0x1a1   : > { %v3435_v39 = vpack.c.bf16 %v2831_v35, %v2831_v35  ;;  %v2832_v40 = vmax.f32 %v2800_v21, 0.0  ;;  %v3854_v41 = vadd.f32 %v2638_v9, %v4559_v23  ;;  %v3820_v42 = vpop.f32.mrb[14].mxu0 }
 0x1a2   : > { %2994 = vst.msk [vmem:[%s4586_s5 + $0x28] sm:$0xf] %vm2983_vm3, %v3437_v36  ;;  %v3438_v43 = vpack.c.bf16 %v2834_v37, %v2834_v37  ;;  %v2768_v44 = vmul.f32 %v3853_v38, %v4568_v27  ;;  %v3855_v45 = vadd.f32 %v3820_v42, %v4561_v24  ;;  %v2641_v46 = vpop.f32.mrb[15].mxu0 }
 0x1a3   : > { %2992 = vst.msk [vmem:[%s4586_s5 + $0x20] sm:$0xf] %vm2983_vm3, %v3435_v39  ;;  %v3436_v47 = vpack.c.bf16 %v2832_v40, %v2832_v40  ;;  %v2766_v22 = vmul.f32 %v3854_v41, %v4568_v27  ;;  %v3856_v48 = vadd.f32 %v2641_v46, %v4563_v25 }
 0x1a4   : > { %2995 = vst.msk [vmem:[%s4586_s5 + $0x2c] sm:$0xf] %vm2983_vm3, %v3438_v43  ;;  %v2805_v23 = vadd.f32 %v4573_v30, %v2768_v44  ;;  %v2769_v49 = vmul.f32 %v3855_v45, %v4568_v27 }
 0x1a5   : > { %2993 = vst.msk [vmem:[%s4586_s5 + $0x24] sm:$0xf] %vm2983_vm3, %v3436_v47  ;;  %v2803_v50 = vadd.f32 %v4573_v30, %v2766_v22  ;;  %v2767_v24 = vmul.f32 %v3856_v48, %v4568_v27 }
 0x1a6   : > { %v2837_v51 = vmax.f32 %v2805_v23, 0.0  ;;  %v2806_v52 = vadd.f32 %v4573_v30, %v2769_v49 }
 0x1a7   : > { %v3715_v53 = vpop.f32.mrb[16].mxu1  ;;  %v2835_v54 = vmax.f32 %v2803_v50, 0.0  ;;  %v2804_v25 = vadd.f32 %v4573_v30, %v2767_v24  ;;  %v3823_v55 = vpop.f32.mrb[16].mxu0 }
 0x1a8   : > { %v1547_v56 = vpop.f32.mrb[17].mxu1  ;;  %v3441_v57 = vpack.c.bf16 %v2837_v51, %v2837_v51  ;;  %v2838_v58 = vmax.f32 %v2806_v52, 0.0  ;;  %v3857_v59 = vadd.f32 %v3823_v55, %v3715_v53  ;;  %v2654_v60 = vpop.f32.mrb[17].mxu0 }
 0x1a9   : > { %v3716_v61 = vpop.f32.mrb[18].mxu1  ;;  %v3439_v62 = vpack.c.bf16 %v2835_v54, %v2835_v54  ;;  %v2836_v63 = vmax.f32 %v2804_v25, 0.0  ;;  %v3858_v0 = vadd.f32 %v2654_v60, %v1547_v56  ;;  %v3824_v2 = vpop.f32.mrb[18].mxu0 }
 0x1aa   : > { %v1550_v3 = vpop.f32.mrb[19].mxu1  ;;  %2998 = vst.msk [vmem:[%s4586_s5 + $0x38] sm:$0xf] %vm2983_vm3, %v3441_v57  ;;  %v3442_v4 = vpack.c.bf16 %v2838_v58, %v2838_v58  ;;  %v2772_v5 = vmul.f32 %v3857_v59, %v4568_v27  ;;  %v3859_v7 = vadd.f32 %v3824_v2, %v3716_v61  ;;  %v2657_v8 = vpop.f32.mrb[19].mxu0 }
 0x1ab   : > { %2996 = vst.msk [vmem:[%s4586_s5 + $0x30] sm:$0xf] %vm2983_vm3, %v3439_v62  ;;  %v3440_v10 = vpack.c.bf16 %v2836_v63, %v2836_v63  ;;  %v2770_v11 = vmul.f32 %v3858_v0, %v4568_v27  ;;  %v3860_v12 = vadd.f32 %v2657_v8, %v1550_v3 }
 0x1ac   : > { %2999 = vst.msk [vmem:[%s4586_s5 + $0x3c] sm:$0xf] %vm2983_vm3, %v3442_v4  ;;  %v2809_v13 = vadd.f32 %v4573_v30, %v2772_v5  ;;  %v2773_v14 = vmul.f32 %v3859_v7, %v4568_v27 }
 0x1ad   : > { %2997 = vst.msk [vmem:[%s4586_s5 + $0x34] sm:$0xf] %vm2983_vm3, %v3440_v10  ;;  %v2807_v15 = vadd.f32 %v4573_v30, %v2770_v11  ;;  %v2771_v16 = vmul.f32 %v3860_v12, %v4568_v27 }
 0x1ae   : > { %v2841_v17 = vmax.f32 %v2809_v13, 0.0  ;;  %v2810_v18 = vadd.f32 %v4573_v30, %v2773_v14 }
 0x1af   : > { %v3719_v26 = vpop.f32.mrb[20].mxu1  ;;  %v2839_v28 = vmax.f32 %v2807_v15, 0.0  ;;  %v2808_v19 = vadd.f32 %v4573_v30, %v2771_v16  ;;  %v3827_v29 = vpop.f32.mrb[20].mxu0 }
 0x1b0   : > { %v1563_v6 = vpop.f32.mrb[21].mxu1  ;;  %v3445_v31 = vpack.c.bf16 %v2841_v17, %v2841_v17  ;;  %v2842_v32 = vmax.f32 %v2810_v18, 0.0  ;;  %v3861_v20 = vadd.f32 %v3827_v29, %v3719_v26  ;;  %v2670_v33 = vpop.f32.mrb[21].mxu0 }
 0x1b1   : > { %v3720_v34 = vpop.f32.mrb[22].mxu1  ;;  %v3443_v35 = vpack.c.bf16 %v2839_v28, %v2839_v28  ;;  %v2840_v21 = vmax.f32 %v2808_v19, 0.0  ;;  %v3862_v1 = vadd.f32 %v2670_v33, %v1563_v6  ;;  %v3828_v36 = vpop.f32.mrb[22].mxu0 }
 0x1b2   : > { %v1566_v37 = vpop.f32.mrb[23].mxu1  ;;  %3002 = vst.msk [vmem:[%s4586_s5 + $0x48] sm:$0xf] %vm2983_vm3, %v3445_v31  ;;  %v3446_v38 = vpack.c.bf16 %v2842_v32, %v2842_v32  ;;  %v2776_v9 = vmul.f32 %v3861_v20, %v4568_v27  ;;  %v3863_v39 = vadd.f32 %v3828_v36, %v3720_v34  ;;  %v2673_v40 = vpop.f32.mrb[23].mxu0 }
 0x1b3   : > { %3000 = vst.msk [vmem:[%s4586_s5 + $0x40] sm:$0xf] %vm2983_vm3, %v3443_v35  ;;  %v3444_v41 = vpack.c.bf16 %v2840_v21, %v2840_v21  ;;  %v2774_v42 = vmul.f32 %v3862_v1, %v4568_v27  ;;  %v3864_v43 = vadd.f32 %v2673_v40, %v1566_v37 }
 0x1b4   : > { %3003 = vst.msk [vmem:[%s4586_s5 + $0x4c] sm:$0xf] %vm2983_vm3, %v3446_v38  ;;  %v2813_v44 = vadd.f32 %v4573_v30, %v2776_v9  ;;  %v2777_v45 = vmul.f32 %v3863_v39, %v4568_v27 }
 0x1b5   : > { %3001 = vst.msk [vmem:[%s4586_s5 + $0x44] sm:$0xf] %vm2983_vm3, %v3444_v41  ;;  %v2811_v46 = vadd.f32 %v4573_v30, %v2774_v42  ;;  %v2775_v47 = vmul.f32 %v3864_v43, %v4568_v27 }
 0x1b6   : > { %v2845_v22 = vmax.f32 %v2813_v44, 0.0  ;;  %v2814_v48 = vadd.f32 %v4573_v30, %v2777_v45 }
 0x1b7   : > { %v3723_v23 = vpop.f32.mrb[24].mxu1  ;;  %v2843_v49 = vmax.f32 %v2811_v46, 0.0  ;;  %v2812_v50 = vadd.f32 %v4573_v30, %v2775_v47  ;;  %v3831_v24 = vpop.f32.mrb[24].mxu0 }
 0x1b8   : > { %v1579_v51 = vpop.f32.mrb[25].mxu1  ;;  %v3449_v52 = vpack.c.bf16 %v2845_v22, %v2845_v22  ;;  %v2846_v53 = vmax.f32 %v2814_v48, 0.0  ;;  %v3865_v54 = vadd.f32 %v3831_v24, %v3723_v23  ;;  %v2686_v25 = vpop.f32.mrb[25].mxu0 }
 0x1b9   : > { %v3724_v55 = vpop.f32.mrb[26].mxu1  ;;  %v3447_v56 = vpack.c.bf16 %v2843_v49, %v2843_v49  ;;  %v2844_v57 = vmax.f32 %v2812_v50, 0.0  ;;  %v3866_v58 = vadd.f32 %v2686_v25, %v1579_v51  ;;  %v3832_v59 = vpop.f32.mrb[26].mxu0 }
 0x1ba   : > { %v1582_v60 = vpop.f32.mrb[27].mxu1  ;;  %3006 = vst.msk [vmem:[%s4586_s5 + $0x58] sm:$0xf] %vm2983_vm3, %v3449_v52  ;;  %v3450_v61 = vpack.c.bf16 %v2846_v53, %v2846_v53  ;;  %v2780_v62 = vmul.f32 %v3865_v54, %v4568_v27  ;;  %v3867_v63 = vadd.f32 %v3832_v59, %v3724_v55  ;;  %v2689_v0 = vpop.f32.mrb[27].mxu0 }
 0x1bb   : > { %3004 = vst.msk [vmem:[%s4586_s5 + $0x50] sm:$0xf] %vm2983_vm3, %v3447_v56  ;;  %v3448_v2 = vpack.c.bf16 %v2844_v57, %v2844_v57  ;;  %v2778_v3 = vmul.f32 %v3866_v58, %v4568_v27  ;;  %v3868_v4 = vadd.f32 %v2689_v0, %v1582_v60 }
 0x1bc   : > { %3007 = vst.msk [vmem:[%s4586_s5 + $0x5c] sm:$0xf] %vm2983_vm3, %v3450_v61  ;;  %v2817_v5 = vadd.f32 %v4573_v30, %v2780_v62  ;;  %v2781_v7 = vmul.f32 %v3867_v63, %v4568_v27 }
 0x1bd   : > { %3005 = vst.msk [vmem:[%s4586_s5 + $0x54] sm:$0xf] %vm2983_vm3, %v3448_v2  ;;  %v2815_v8 = vadd.f32 %v4573_v30, %v2778_v3  ;;  %v2779_v10 = vmul.f32 %v3868_v4, %v4568_v27 }
 0x1be   : > { %v2849_v11 = vmax.f32 %v2817_v5, 0.0  ;;  %v2818_v12 = vadd.f32 %v4573_v30, %v2781_v7 }
 0x1bf   : > { %v3727_v13 = vpop.f32.mrb[28].mxu1  ;;  %v2847_v14 = vmax.f32 %v2815_v8, 0.0  ;;  %v2816_v15 = vadd.f32 %v4573_v30, %v2779_v10  ;;  %v3835_v16 = vpop.f32.mrb[28].mxu0 }
 0x1c0   : > { %v1595_v17 = vpop.f32.mrb[29].mxu1  ;;  %v3453_v18 = vpack.c.bf16 %v2849_v11, %v2849_v11  ;;  %v2850_v26 = vmax.f32 %v2818_v12, 0.0  ;;  %v3869_v28 = vadd.f32 %v3835_v16, %v3727_v13  ;;  %v2702_v19 = vpop.f32.mrb[29].mxu0 }
 0x1c1   : > { %v3728_v29 = vpop.f32.mrb[30].mxu1  ;;  %v3451_v6 = vpack.c.bf16 %v2847_v14, %v2847_v14  ;;  %v2848_v31 = vmax.f32 %v2816_v15, 0.0  ;;  %v3870_v32 = vadd.f32 %v2702_v19, %v1595_v17  ;;  %v3836_v20 = vpop.f32.mrb[30].mxu0 }
 0x1c2   : > { %v1598_v33 = vpop.f32.mrb[31].mxu1  ;;  %3010 = vst.msk [vmem:[%s4586_s5 + $0x68] sm:$0xf] %vm2983_vm3, %v3453_v18  ;;  %v3454_v34 = vpack.c.bf16 %v2850_v26, %v2850_v26  ;;  %v2784_v35 = vmul.f32 %v3869_v28, %v4568_v27  ;;  %v3871_v21 = vadd.f32 %v3836_v20, %v3728_v29  ;;  %v2705_v1 = vpop.f32.mrb[31].mxu0 }
 0x1c3   : > { %3008 = vst.msk [vmem:[%s4586_s5 + $0x60] sm:$0xf] %vm2983_vm3, %v3451_v6  ;;  %v3452_v36 = vpack.c.bf16 %v2848_v31, %v2848_v31  ;;  %v2782_v37 = vmul.f32 %v3870_v32, %v4568_v27  ;;  %v3872_v38 = vadd.f32 %v2705_v1, %v1598_v33 }
 0x1c4   : > { %3011 = vst.msk [vmem:[%s4586_s5 + $0x6c] sm:$0xf] %vm2983_vm3, %v3454_v34  ;;  %v2821_v9 = vadd.f32 %v4573_v30, %v2784_v35  ;;  %v2785_v39 = vmul.f32 %v3871_v21, %v4568_v27 }
 0x1c5   : > { %3009 = vst.msk [vmem:[%s4586_s5 + $0x64] sm:$0xf] %vm2983_vm3, %v3452_v36  ;;  %v2819_v40 = vadd.f32 %v4573_v30, %v2782_v37  ;;  %v2783_v41 = vmul.f32 %v3872_v38, %v4568_v27 }
 0x1c6   : > { %v2853_v42 = vmax.f32 %v2821_v9, 0.0  ;;  %v2822_v43 = vadd.f32 %v4573_v30, %v2785_v39 }
 0x1c7   : > { %v2851_v44 = vmax.f32 %v2819_v40, 0.0  ;;  %v2820_v45 = vadd.f32 %v4573_v30, %v2783_v41 }
 0x1c8   : > { %v3457_v46 = vpack.c.bf16 %v2853_v42, %v2853_v42  ;;  %v2854_v47 = vmax.f32 %v2822_v43, 0.0 }
 0x1c9   : > { %v3455_v22 = vpack.c.bf16 %v2851_v44, %v2851_v44  ;;  %v2852_v48 = vmax.f32 %v2820_v45, 0.0 }
 0x1ca   : > { %3014 = vst.msk [vmem:[%s4586_s5 + $0x78] sm:$0xf] %vm2983_vm3, %v3457_v46  ;;  %v3458_v23 = vpack.c.bf16 %v2854_v47, %v2854_v47 }
 0x1cb   : > { %3012 = vst.msk [vmem:[%s4586_s5 + $0x70] sm:$0xf] %vm2983_vm3, %v3455_v22  ;;  %v3456_v49 = vpack.c.bf16 %v2852_v48, %v2852_v48 }
 0x1cc   : > { %3015 = vst.msk [vmem:[%s4586_s5 + $0x7c] sm:$0xf] %vm2983_vm3, %v3458_v23 }
 0x1cd   : > { %3013 = vst.msk [vmem:[%s4586_s5 + $0x74] sm:$0xf] %vm2983_vm3, %v3456_v49 }
 0x1ce PF: > { %s13_s14 = sadd.s32 1, %s4207_s14   ;;  %s4729_s12 = smov %s4203_s13 }
 0x1cf   : > { %p10_p5 = scmp.ge.s32.totalorder %s13_s14, 4   ;;  %s4730_s13 = smov %s4732_s15 }
 0x1d1   :  { %12 = sbr.rel (!%p10_p5) target bundleno = 2 (0x2), region = 74 }

</bundles_post_ra>
